<compile_context>
chip_gen: v6e
topology: v6e:2x2x1
jax: 0.10.0
libtpu: 0.0.40
codegen_flags: <defaults>
</compile_context>

<pallas_src>
import functools

import jax
import jax.numpy as jnp
from jax.experimental import pallas as pl
from jax.experimental.pallas import tpu as pltpu


# -----------------------------------------------------------------------------
# Kernel body: [BN+ReLU of previous stage] -> conv3x3 (banded matmul) -> BN stats
# -----------------------------------------------------------------------------
def _stage_kernel(*refs, H, W, Cin, Cout, tH, fused_bn):
    """
    refs (fused_bn=False): x_ref, w_ref, y_ref, st_ref
    refs (fused_bn=True) : x_ref, w_ref, scale_ref, shift_ref, y_ref, st_ref

      x_ref     : (1, H, W*Cin)    lane-dense full image of one batch element
                                   (same block across the h axis -> DMA'd once per n)
      w_ref     : (3, W*Cin, W*Cout)  banded conv weight (kx taps + W zero-pad folded in)
      scale/shift: (1, W*Cin)      previous stage's BN scale / shift, tiled across W
      y_ref     : (1, tH, W*Cout)  lane-dense raw conv output tile
      st_ref    : (1, 2, W*Cout)   [sum, sum_sq] partials, accumulated across h
    """
    if fused_bn:
        x_ref, w_ref, scale_ref, shift_ref, y_ref, st_ref = refs
    else:
        x_ref, w_ref, y_ref, st_ref = refs
        scale_ref = shift_ref = None

    h = pl.program_id(1)
    row0 = pl.multiple_of(h * tH, tH)          # first output row of this tile

    def act(v):
        v = v.astype(jnp.float32)
        if fused_bn:
            # BN (previous stage's batch stats) + ReLU applied on the fly, before
            # the zero halo (matches PyTorch: conv zero-pads the activated tensor).
            v = jnp.maximum(v * scale_ref[...] + shift_ref[...], 0.0)
        return v

    # Activated rows row0-1 .. row0+tH with zero halo rows at the image border.
    top = act(x_ref[0, pl.ds(jnp.maximum(row0 - 1, 0), 1), :])
    top = jnp.where(row0 > 0, top, 0.0)
    mid = act(x_ref[0, pl.ds(row0, tH), :])
    bot = act(x_ref[0, pl.ds(jnp.minimum(row0 + tH, H - 1), 1), :])
    bot = jnp.where(row0 + tH < H, bot, 0.0)
    rows = jnp.concatenate([top, mid, bot], axis=0)          # (tH+2, W*Cin)

    # Banded conv: only the 3 ky row offsets remain -> 3 accumulating MXU matmuls.
    acc = jnp.dot(rows[0:tH], w_ref[0], preferred_element_type=jnp.float32)
    acc += jnp.dot(rows[1:tH + 1], w_ref[1], preferred_element_type=jnp.float32)
    acc += jnp.dot(rows[2:tH + 2], w_ref[2], preferred_element_type=jnp.float32)
    # acc: (tH, W*Cout), already lane-dense.

    y_ref[0] = acc.astype(y_ref.dtype)

    # BN batch-stat partials per lane (i.e. per (w, c) pair); sublane reduce only.
    part = jnp.concatenate(
        [jnp.sum(acc, axis=0, keepdims=True),
         jnp.sum(acc * acc, axis=0, keepdims=True)], axis=0)  # (2, W*Cout)

    @pl.when(h == 0)
    def _():
        st_ref[0] = part

    @pl.when(h > 0)
    def _():
        st_ref[0] = st_ref[0] + part


# -----------------------------------------------------------------------------
# pallas_call wrapper for one conv stage
# -----------------------------------------------------------------------------
def conv_stage(x_flat, w_band, W, Cin, Cout, tH, scale_t=None, shift_t=None):
    """x_flat: (N, H, W*Cin) lane-dense. Returns (y (N,H,W*Cout), stats (N,2,W*Cout))."""
    N, H, WCin = x_flat.shape
    WCout = W * Cout
    nH = H // tH
    fused_bn = scale_t is not None

    kernel = functools.partial(_stage_kernel, H=H, W=W, Cin=Cin, Cout=Cout,
                               tH=tH, fused_bn=fused_bn)

    in_specs = [
        # Whole image resident per batch element, re-used across the h axis.
        # TODO(synk): for large H*W*Cin switch to a halo'd row tile (manual DMA) and
        # set vmem_limit_bytes explicitly -- v7x has only 64 MiB physical VMEM.
        pl.BlockSpec((1, H, WCin), lambda n, h: (n, 0, 0)),
        pl.BlockSpec((3, WCin, WCout), lambda n, h: (0, 0, 0)),
    ]
    args = [x_flat, w_band]
    if fused_bn:
        in_specs += [pl.BlockSpec((1, WCin), lambda n, h: (0, 0)),
                     pl.BlockSpec((1, WCin), lambda n, h: (0, 0))]
        args += [scale_t, shift_t]

    y, st = pl.pallas_call(
        kernel,
        out_shape=(jax.ShapeDtypeStruct((N, H, WCout), jnp.float32),
                   jax.ShapeDtypeStruct((N, 2, WCout), jnp.float32)),
        grid_spec=pltpu.PrefetchScalarGridSpec(
            num_scalar_prefetch=0,
            grid=(N, nH),
            in_specs=in_specs,
            out_specs=(pl.BlockSpec((1, tH, WCout), lambda n, h: (n, h, 0)),
                       pl.BlockSpec((1, 2, WCout), lambda n, h: (n, 0, 0))),
        ),
        # N parallel (feeds both v7x TensorCores at batch=2); h arbitrary because
        # the stats output block is a resident accumulator across h.
        compiler_params=pltpu.CompilerParams(
            dimension_semantics=("parallel", "arbitrary")),
    )(*args)
    return y, st


# -----------------------------------------------------------------------------
# Plain-JAX glue (tiny O(C) / O(W*C) math)
# -----------------------------------------------------------------------------
def _banded_weight(w_hwio, W):
    """(3,3,Cin,Cout) HWIO -> (3, W*Cin, W*Cout) banded weight (kx + W zero-pad)."""
    kH, kW, Cin, Cout = w_hwio.shape
    wi = jnp.arange(W)[:, None]
    wo = jnp.arange(W)[None, :]
    kx = wi - wo + (kW // 2)                              # (W, W)
    valid = (kx >= 0) & (kx < kW)
    band = w_hwio[:, jnp.clip(kx, 0, kW - 1), :, :]       # (kH, Wi, Wo, Cin, Cout)
    band = band * valid[None, :, :, None, None].astype(w_hwio.dtype)
    band = jnp.transpose(band, (0, 1, 3, 2, 4))           # (kH, Wi, Cin, Wo, Cout)
    return band.reshape(kH, W * Cin, W * Cout)


def _bn_scale_shift(stats, gamma, beta, W, count, eps):
    # stats: (N, 2, W*C) lane-dense [sum, sum_sq] partials; train-mode BatchNorm2d
    # uses biased batch variance.
    C = gamma.shape[0]
    s = jnp.sum(stats, axis=0).reshape(2, W, C).sum(axis=1)   # (2, C)
    mean = s[0] / count
    # TODO(synk): E[x^2]-E[x]^2 in f32 can cancel for large-magnitude activations;
    # switch to a mean-shifted / Welford accumulation before scaling to real
    # feature maps. Clamp guards tiny negative values.
    var = jnp.maximum(s[1] / count - mean * mean, 0.0)
    scale = gamma / jnp.sqrt(var + eps)
    shift = beta - mean * scale
    return scale, shift


def _pick_th(H, W):
    # v5e-class MXU is 128-deep -> M=128 rows per push; v6e/v7x are 256-deep ->
    # target M ~= 256 (fewer grid steps, less per-step fixed overhead).
    try:
        kind = jax.devices()[0].device_kind.lower()
    except Exception:
        kind = ""
    target_m = 128 if any(v in kind for v in ("v2", "v3", "v4", "v5")) else 256
    best = None
    t = 8
    while t <= H:
        if H % t == 0 and t * W <= target_m:
            best = t
        t += 8
    if best is None:
        best = 8 if (H >= 8 and H % 8 == 0) else H
    return best


# -----------------------------------------------------------------------------
# End-to-end forward
# -----------------------------------------------------------------------------
@jax.jit
def double_conv(x_nchw, w1, g1, b1, w2, g2, b2):
    eps = 1e-5
    N, Cin, H, W = x_nchw.shape
    Cmid = w1.shape[-1]
    Cout = w2.shape[-1]
    tH = _pick_th(H, W)
    count = jnp.float32(N * H * W)

    # Boundary transform (module contract is NCHW) to lane-dense (N, H, W*Cin);
    # everything stays in this layout until the final transpose back.
    x = jnp.transpose(x_nchw, (0, 2, 3, 1)).astype(jnp.float32).reshape(N, H, W * Cin)

    w1b = _banded_weight(w1.astype(jnp.float32), W)       # (3, W*Cin,  W*Cmid)
    w2b = _banded_weight(w2.astype(jnp.float32), W)       # (3, W*Cmid, W*Cout)

    # Stage 1: conv1 + fused BN batch-stat partials.
    y1, st1 = conv_stage(x, w1b, W, Cin, Cmid, tH)
    scale1, shift1 = _bn_scale_shift(st1, g1, b1, W, count, eps)

    # Stage 2: BN1+ReLU applied on the fly inside the kernel, then conv2 + stats.
    y2, st2 = conv_stage(y1, w2b, W, Cmid, Cout, tH,
                         scale_t=jnp.tile(scale1, W).reshape(1, W * Cmid),
                         shift_t=jnp.tile(shift1, W).reshape(1, W * Cmid))
    scale2, shift2 = _bn_scale_shift(st2, g2, b2, W, count, eps)

    # Final BN2 + ReLU as plain jnp: XLA fuses it with the NHWC->NCHW transpose.
    out = jnp.maximum(y2.reshape(N, H, W, Cout) * scale2 + shift2, 0.0)
    return jnp.transpose(out, (0, 3, 1, 2))               # NHWC -> NCHW


# -----------------------------------------------------------------------------
# Pure-JAX reference (same semantics as the PyTorch module in train mode)
# -----------------------------------------------------------------------------
def _reference(x_nchw, w1, g1, b1, w2, g2, b2, eps=1e-5):
    def stage(x, w, g, b):
        y = jax.lax.conv_general_dilated(
            x, w, window_strides=(1, 1), padding=((1, 1), (1, 1)),
            dimension_numbers=("NHWC", "HWIO", "NHWC"),
            precision=jax.lax.Precision.HIGHEST)
        mean = jnp.mean(y, axis=(0, 1, 2))
        var = jnp.var(y, axis=(0, 1, 2))
        yn = (y - mean) / jnp.sqrt(var + eps) * g + b
        return jnp.maximum(yn, 0.0)

    x = jnp.transpose(x_nchw, (0, 2, 3, 1)).astype(jnp.float32)
    h = stage(x, w1, g1, b1)
    o = stage(h, w2, g2, b2)
    return jnp.transpose(o, (0, 3, 1, 2))


# -----------------------------------------------------------------------------
# Main
# -----------------------------------------------------------------------------
if __name__ == "__main__":
    N, C_IN, C_OUT, H, W = 2, 4, 8, 16, 16
    C_MID = C_OUT  # mid_channels defaults to out_channels

    key = jax.random.PRNGKey(0)
    kx, kw1, kw2, kg1, kb1, kg2, kb2 = jax.random.split(key, 7)

    x = jax.random.normal(kx, (N, C_IN, H, W), dtype=jnp.float32)

    # Conv weights in HWIO (3, 3, Cin, Cout); equivalent to PyTorch OIHW transposed.
    w1 = jax.random.normal(kw1, (3, 3, C_IN, C_MID), dtype=jnp.float32) * 0.1
    w2 = jax.random.normal(kw2, (3, 3, C_MID, C_OUT), dtype=jnp.float32) * 0.1
    # BatchNorm affine params (small perturbations around the PyTorch init).
    g1 = 1.0 + 0.1 * jax.random.normal(kg1, (C_MID,), dtype=jnp.float32)
    b1 = 0.1 * jax.random.normal(kb1, (C_MID,), dtype=jnp.float32)
    g2 = 1.0 + 0.1 * jax.random.normal(kg2, (C_OUT,), dtype=jnp.float32)
    b2 = 0.1 * jax.random.normal(kb2, (C_OUT,), dtype=jnp.float32)

    out = double_conv(x, w1, g1, b1, w2, g2, b2)
    jax.block_until_ready(out)
    assert out.shape == (N, C_OUT, H, W), out.shape

    ref = _reference(x, w1, g1, b1, w2, g2, b2)
    max_err = float(jnp.max(jnp.abs(out - ref)))
    assert max_err < 5e-3, f"max abs error vs reference: {max_err}"

    print("KERNEL_OK")
</pallas_src>

<mosaic_0001>
module attributes {stable_mosaic.version = 11 : i64} {
  func.func @_stage_kernel(%arg0: i32, %arg1: i32, %arg2: memref<1x16x64xf32, #tpu.memory_space<vmem>>, %arg3: memref<3x64x128xf32, #tpu.memory_space<vmem>>, %arg4: memref<1x16x128xf32, #tpu.memory_space<vmem>>, %arg5: memref<1x2x128xf32, #tpu.memory_space<vmem>>) attributes {dimension_semantics = [#tpu.dimension_semantics<parallel>, #tpu.dimension_semantics<arbitrary>], iteration_bounds = array<i64: 2, 1>, scalar_prefetch = 0 : i64, scratch_operands = 0 : i64, tpu.core_type = #tpu.core_type<tc>, window_params = [{transform_indices = @transform_0, window_bounds = array<i64: 1, 16, 64>}, {pipeline_mode = #tpu.pipeline_mode<synchronous>, transform_indices = @transform_1, window_bounds = array<i64: 3, 64, 128>}, {transform_indices = @transform_2, window_bounds = array<i64: 1, 16, 128>}, {transform_indices = @transform_3, window_bounds = array<i64: 1, 2, 128>}]} {
    %c16_i32 = arith.constant 16 : i32
    %0 = arith.muli %arg1, %c16_i32 : i32
    %1 = tpu.assume_multiple %0, 16 : i32
    %c1_i32 = arith.constant 1 : i32
    %2 = arith.subi %1, %c1_i32 : i32
    %c0_i32 = arith.constant 0 : i32
    %3 = arith.maxsi %2, %c0_i32 : i32
    %c0 = arith.constant 0 : index
    %4 = arith.index_cast %3 : i32 to index
    %c0_0 = arith.constant 0 : index
    %5 = vector.load %arg2[%c0, %4, %c0_0] : memref<1x16x64xf32, #tpu.memory_space<vmem>>, vector<1x1x64xf32>
    %6 = vector.shape_cast %5 : vector<1x1x64xf32> to vector<1x64xf32>
    %c0_i32_1 = arith.constant 0 : i32
    %7 = arith.cmpi sgt, %1, %c0_i32_1 : i32
    %cst = arith.constant 0.000000e+00 : f32
    %8 = vector.broadcast %cst : f32 to vector<1x64xf32>
    %9 = arith.select %7, %6, %8 : vector<1x64xf32>
    %c0_2 = arith.constant 0 : index
    %10 = arith.index_cast %1 : i32 to index
    %c0_3 = arith.constant 0 : index
    %11 = vector.load %arg2[%c0_2, %10, %c0_3] : memref<1x16x64xf32, #tpu.memory_space<vmem>>, vector<1x16x64xf32>
    %12 = vector.shape_cast %11 : vector<1x16x64xf32> to vector<16x64xf32>
    %c16_i32_4 = arith.constant 16 : i32
    %13 = arith.addi %1, %c16_i32_4 : i32
    %c15_i32 = arith.constant 15 : i32
    %14 = arith.minsi %13, %c15_i32 : i32
    %c0_5 = arith.constant 0 : index
    %15 = arith.index_cast %14 : i32 to index
    %c0_6 = arith.constant 0 : index
    %16 = vector.load %arg2[%c0_5, %15, %c0_6] : memref<1x16x64xf32, #tpu.memory_space<vmem>>, vector<1x1x64xf32>
    %17 = vector.shape_cast %16 : vector<1x1x64xf32> to vector<1x64xf32>
    %c16_i32_7 = arith.constant 16 : i32
    %18 = arith.addi %1, %c16_i32_7 : i32
    %c16_i32_8 = arith.constant 16 : i32
    %19 = arith.cmpi slt, %18, %c16_i32_8 : i32
    %cst_9 = arith.constant 0.000000e+00 : f32
    %20 = vector.broadcast %cst_9 : f32 to vector<1x64xf32>
    %21 = arith.select %19, %17, %20 : vector<1x64xf32>
    %22 = tpu.concatenate %9, %12, %21 in 0 : vector<1x64xf32>, vector<16x64xf32>, vector<1x64xf32> -> vector<18x64xf32>
    %23 = vector.extract_strided_slice %22 {offsets = [0, 0], sizes = [16, 64], strides = [1, 1]} : vector<18x64xf32> to vector<16x64xf32>
    %c0_10 = arith.constant 0 : index
    %c0_11 = arith.constant 0 : index
    %c0_12 = arith.constant 0 : index
    %24 = vector.load %arg3[%c0_10, %c0_11, %c0_12] : memref<3x64x128xf32, #tpu.memory_space<vmem>>, vector<1x64x128xf32>
    %25 = vector.shape_cast %24 : vector<1x64x128xf32> to vector<64x128xf32>
    %cst_13 = arith.constant dense<0.000000e+00> : vector<16x128xf32>
    %26 = tpu.matmul %23, %25, %cst_13 {dimension_numbers = #tpu.dot_dimension_numbers<[1], [0], [0], [1], [0, 0, 1, 1], [], []>} : vector<16x64xf32>, vector<64x128xf32>, vector<16x128xf32> -> vector<16x128xf32>
    %27 = vector.extract_strided_slice %22 {offsets = [1, 0], sizes = [16, 64], strides = [1, 1]} : vector<18x64xf32> to vector<16x64xf32>
    %c1 = arith.constant 1 : index
    %c0_14 = arith.constant 0 : index
    %c0_15 = arith.constant 0 : index
    %28 = vector.load %arg3[%c1, %c0_14, %c0_15] : memref<3x64x128xf32, #tpu.memory_space<vmem>>, vector<1x64x128xf32>
    %29 = vector.shape_cast %28 : vector<1x64x128xf32> to vector<64x128xf32>
    %cst_16 = arith.constant dense<0.000000e+00> : vector<16x128xf32>
    %30 = tpu.matmul %27, %29, %cst_16 {dimension_numbers = #tpu.dot_dimension_numbers<[1], [0], [0], [1], [0, 0, 1, 1], [], []>} : vector<16x64xf32>, vector<64x128xf32>, vector<16x128xf32> -> vector<16x128xf32>
    %31 = arith.addf %26, %30 : vector<16x128xf32>
    %32 = vector.extract_strided_slice %22 {offsets = [2, 0], sizes = [16, 64], strides = [1, 1]} : vector<18x64xf32> to vector<16x64xf32>
    %c2 = arith.constant 2 : index
    %c0_17 = arith.constant 0 : index
    %c0_18 = arith.constant 0 : index
    %33 = vector.load %arg3[%c2, %c0_17, %c0_18] : memref<3x64x128xf32, #tpu.memory_space<vmem>>, vector<1x64x128xf32>
    %34 = vector.shape_cast %33 : vector<1x64x128xf32> to vector<64x128xf32>
    %cst_19 = arith.constant dense<0.000000e+00> : vector<16x128xf32>
    %35 = tpu.matmul %32, %34, %cst_19 {dimension_numbers = #tpu.dot_dimension_numbers<[1], [0], [0], [1], [0, 0, 1, 1], [], []>} : vector<16x64xf32>, vector<64x128xf32>, vector<16x128xf32> -> vector<16x128xf32>
    %36 = arith.addf %31, %35 : vector<16x128xf32>
    %c0_20 = arith.constant 0 : index
    %c0_21 = arith.constant 0 : index
    %c0_22 = arith.constant 0 : index
    %37 = vector.load %arg4[%c0_20, %c0_21, %c0_22] : memref<1x16x128xf32, #tpu.memory_space<vmem>>, vector<1x16x128xf32>
    %38 = vector.shape_cast %37 : vector<1x16x128xf32> to vector<16x128xf32>
    %39 = vector.shape_cast %36 : vector<16x128xf32> to vector<1x16x128xf32>
    tpu.vector_store %arg4[%c0_20, %c0_21, %c0_22], %39 {strides = array<i32>} : memref<1x16x128xf32, #tpu.memory_space<vmem>>, vector<1x16x128xf32>,
    %cst_23 = arith.constant dense<0.000000e+00> : vector<128xf32>
    %40 = vector.multi_reduction <add>, %36, %cst_23 [0] : vector<16x128xf32> to vector<128xf32>
    %41 = vector.shape_cast %40 : vector<128xf32> to vector<1x128xf32>
    %42 = arith.mulf %36, %36 : vector<16x128xf32>
    %cst_24 = arith.constant dense<0.000000e+00> : vector<128xf32>
    %43 = vector.multi_reduction <add>, %42, %cst_24 [0] : vector<16x128xf32> to vector<128xf32>
    %44 = vector.shape_cast %43 : vector<128xf32> to vector<1x128xf32>
    %45 = tpu.concatenate %41, %44 in 0 : vector<1x128xf32>, vector<1x128xf32> -> vector<2x128xf32>
    %c0_i32_25 = arith.constant 0 : i32
    %46 = arith.cmpi eq, %arg1, %c0_i32_25 : i32
    %47 = arith.extui %46 : i1 to i32
    %c0_i32_26 = arith.constant 0 : i32
    %48 = arith.cmpi ne, %47, %c0_i32_26 : i32
    scf.if %48 {
      %c0_29 = arith.constant 0 : index
      %c0_30 = arith.constant 0 : index
      %c0_31 = arith.constant 0 : index
      %52 = vector.load %arg5[%c0_29, %c0_30, %c0_31] : memref<1x2x128xf32, #tpu.memory_space<vmem>>, vector<1x2x128xf32>
      %53 = vector.shape_cast %52 : vector<1x2x128xf32> to vector<2x128xf32>
      %54 = vector.shape_cast %45 : vector<2x128xf32> to vector<1x2x128xf32>
      tpu.vector_store %arg5[%c0_29, %c0_30, %c0_31], %54 {strides = array<i32>} : memref<1x2x128xf32, #tpu.memory_space<vmem>>, vector<1x2x128xf32>,
    } else {
    }
    %c0_i32_27 = arith.constant 0 : i32
    %49 = arith.cmpi sgt, %arg1, %c0_i32_27 : i32
    %50 = arith.extui %49 : i1 to i32
    %c0_i32_28 = arith.constant 0 : i32
    %51 = arith.cmpi ne, %50, %c0_i32_28 : i32
    scf.if %51 {
      %c0_29 = arith.constant 0 : index
      %c0_30 = arith.constant 0 : index
      %c0_31 = arith.constant 0 : index
      %52 = vector.load %arg5[%c0_29, %c0_30, %c0_31] : memref<1x2x128xf32, #tpu.memory_space<vmem>>, vector<1x2x128xf32>
      %53 = vector.shape_cast %52 : vector<1x2x128xf32> to vector<2x128xf32>
      %54 = arith.addf %53, %45 : vector<2x128xf32>
      %c0_32 = arith.constant 0 : index
      %c0_33 = arith.constant 0 : index
      %c0_34 = arith.constant 0 : index
      %55 = vector.load %arg5[%c0_32, %c0_33, %c0_34] : memref<1x2x128xf32, #tpu.memory_space<vmem>>, vector<1x2x128xf32>
      %56 = vector.shape_cast %55 : vector<1x2x128xf32> to vector<2x128xf32>
      %57 = vector.shape_cast %54 : vector<2x128xf32> to vector<1x2x128xf32>
      tpu.vector_store %arg5[%c0_32, %c0_33, %c0_34], %57 {strides = array<i32>} : memref<1x2x128xf32, #tpu.memory_space<vmem>>, vector<1x2x128xf32>,
    } else {
    }
    return
  }
  func.func @transform_0(%arg0: i32, %arg1: i32) -> (i32, i32, i32) {
    %c0_i32 = arith.constant 0 : i32
    %c0_i32_0 = arith.constant 0 : i32
    %c0_i32_1 = arith.constant 0 : i32
    return %arg0, %c0_i32, %c0_i32_0 : i32, i32, i32
  }
  func.func @transform_1(%arg0: i32, %arg1: i32) -> (i32, i32, i32) {
    %c0_i32 = arith.constant 0 : i32
    %c0_i32_0 = arith.constant 0 : i32
    %c0_i32_1 = arith.constant 0 : i32
    %c0_i32_2 = arith.constant 0 : i32
    return %c0_i32, %c0_i32_0, %c0_i32_1 : i32, i32, i32
  }
  func.func @transform_2(%arg0: i32, %arg1: i32) -> (i32, i32, i32) {
    %c0_i32 = arith.constant 0 : i32
    %c0_i32_0 = arith.constant 0 : i32
    return %arg0, %arg1, %c0_i32 : i32, i32, i32
  }
  func.func @transform_3(%arg0: i32, %arg1: i32) -> (i32, i32, i32) {
    %c0_i32 = arith.constant 0 : i32
    %c0_i32_0 = arith.constant 0 : i32
    %c0_i32_1 = arith.constant 0 : i32
    return %arg0, %c0_i32, %c0_i32_0 : i32, i32, i32
  }
}

module attributes {stable_mosaic.version = 11 : i64} {
  func.func @_stage_kernel(%arg0: i32, %arg1: i32, %arg2: memref<1x16x128xf32, #tpu.memory_space<vmem>>, %arg3: memref<3x128x128xf32, #tpu.memory_space<vmem>>, %arg4: memref<1x128xf32, #tpu.memory_space<vmem>>, %arg5: memref<1x128xf32, #tpu.memory_space<vmem>>, %arg6: memref<1x16x128xf32, #tpu.memory_space<vmem>>, %arg7: memref<1x2x128xf32, #tpu.memory_space<vmem>>) attributes {dimension_semantics = [#tpu.dimension_semantics<parallel>, #tpu.dimension_semantics<arbitrary>], iteration_bounds = array<i64: 2, 1>, scalar_prefetch = 0 : i64, scratch_operands = 0 : i64, tpu.core_type = #tpu.core_type<tc>, window_params = [{transform_indices = @transform_0, window_bounds = array<i64: 1, 16, 128>}, {pipeline_mode = #tpu.pipeline_mode<synchronous>, transform_indices = @transform_1, window_bounds = array<i64: 3, 128, 128>}, {pipeline_mode = #tpu.pipeline_mode<synchronous>, transform_indices = @transform_2, window_bounds = array<i64: 1, 128>}, {pipeline_mode = #tpu.pipeline_mode<synchronous>, transform_indices = @transform_3, window_bounds = array<i64: 1, 128>}, {transform_indices = @transform_4, window_bounds = array<i64: 1, 16, 128>}, {transform_indices = @transform_5, window_bounds = array<i64: 1, 2, 128>}]} {
    %c16_i32 = arith.constant 16 : i32
    %0 = arith.muli %arg1, %c16_i32 : i32
    %1 = tpu.assume_multiple %0, 16 : i32
    %c1_i32 = arith.constant 1 : i32
    %2 = arith.subi %1, %c1_i32 : i32
    %c0_i32 = arith.constant 0 : i32
    %3 = arith.maxsi %2, %c0_i32 : i32
    %c0 = arith.constant 0 : index
    %4 = arith.index_cast %3 : i32 to index
    %c0_0 = arith.constant 0 : index
    %5 = vector.load %arg2[%c0, %4, %c0_0] : memref<1x16x128xf32, #tpu.memory_space<vmem>>, vector<1x1x128xf32>
    %6 = vector.shape_cast %5 : vector<1x1x128xf32> to vector<1x128xf32>
    %c0_1 = arith.constant 0 : index
    %c0_2 = arith.constant 0 : index
    %7 = vector.load %arg4[%c0_1, %c0_2] : memref<1x128xf32, #tpu.memory_space<vmem>>, vector<1x128xf32>
    %8 = arith.mulf %6, %7 : vector<1x128xf32>
    %c0_3 = arith.constant 0 : index
    %c0_4 = arith.constant 0 : index
    %9 = vector.load %arg5[%c0_3, %c0_4] : memref<1x128xf32, #tpu.memory_space<vmem>>, vector<1x128xf32>
    %10 = arith.addf %8, %9 : vector<1x128xf32>
    %cst = arith.constant 0.000000e+00 : f32
    %11 = vector.broadcast %cst : f32 to vector<1x128xf32>
    %12 = arith.maximumf %10, %11 : vector<1x128xf32>
    %c0_i32_5 = arith.constant 0 : i32
    %13 = arith.cmpi sgt, %1, %c0_i32_5 : i32
    %cst_6 = arith.constant 0.000000e+00 : f32
    %14 = vector.broadcast %cst_6 : f32 to vector<1x128xf32>
    %15 = arith.select %13, %12, %14 : vector<1x128xf32>
    %c0_7 = arith.constant 0 : index
    %16 = arith.index_cast %1 : i32 to index
    %c0_8 = arith.constant 0 : index
    %17 = vector.load %arg2[%c0_7, %16, %c0_8] : memref<1x16x128xf32, #tpu.memory_space<vmem>>, vector<1x16x128xf32>
    %18 = vector.shape_cast %17 : vector<1x16x128xf32> to vector<16x128xf32>
    %c0_9 = arith.constant 0 : index
    %c0_10 = arith.constant 0 : index
    %19 = vector.load %arg4[%c0_9, %c0_10] : memref<1x128xf32, #tpu.memory_space<vmem>>, vector<1x128xf32>
    %20 = vector.broadcast %19 : vector<1x128xf32> to vector<16x128xf32>
    %21 = arith.mulf %18, %20 : vector<16x128xf32>
    %c0_11 = arith.constant 0 : index
    %c0_12 = arith.constant 0 : index
    %22 = vector.load %arg5[%c0_11, %c0_12] : memref<1x128xf32, #tpu.memory_space<vmem>>, vector<1x128xf32>
    %23 = vector.broadcast %22 : vector<1x128xf32> to vector<16x128xf32>
    %24 = arith.addf %21, %23 : vector<16x128xf32>
    %cst_13 = arith.constant 0.000000e+00 : f32
    %25 = vector.broadcast %cst_13 : f32 to vector<16x128xf32>
    %26 = arith.maximumf %24, %25 : vector<16x128xf32>
    %c16_i32_14 = arith.constant 16 : i32
    %27 = arith.addi %1, %c16_i32_14 : i32
    %c15_i32 = arith.constant 15 : i32
    %28 = arith.minsi %27, %c15_i32 : i32
    %c0_15 = arith.constant 0 : index
    %29 = arith.index_cast %28 : i32 to index
    %c0_16 = arith.constant 0 : index
    %30 = vector.load %arg2[%c0_15, %29, %c0_16] : memref<1x16x128xf32, #tpu.memory_space<vmem>>, vector<1x1x128xf32>
    %31 = vector.shape_cast %30 : vector<1x1x128xf32> to vector<1x128xf32>
    %c0_17 = arith.constant 0 : index
    %c0_18 = arith.constant 0 : index
    %32 = vector.load %arg4[%c0_17, %c0_18] : memref<1x128xf32, #tpu.memory_space<vmem>>, vector<1x128xf32>
    %33 = arith.mulf %31, %32 : vector<1x128xf32>
    %c0_19 = arith.constant 0 : index
    %c0_20 = arith.constant 0 : index
    %34 = vector.load %arg5[%c0_19, %c0_20] : memref<1x128xf32, #tpu.memory_space<vmem>>, vector<1x128xf32>
    %35 = arith.addf %33, %34 : vector<1x128xf32>
    %cst_21 = arith.constant 0.000000e+00 : f32
    %36 = vector.broadcast %cst_21 : f32 to vector<1x128xf32>
    %37 = arith.maximumf %35, %36 : vector<1x128xf32>
    %c16_i32_22 = arith.constant 16 : i32
    %38 = arith.addi %1, %c16_i32_22 : i32
    %c16_i32_23 = arith.constant 16 : i32
    %39 = arith.cmpi slt, %38, %c16_i32_23 : i32
    %cst_24 = arith.constant 0.000000e+00 : f32
    %40 = vector.broadcast %cst_24 : f32 to vector<1x128xf32>
    %41 = arith.select %39, %37, %40 : vector<1x128xf32>
    %42 = tpu.concatenate %15, %26, %41 in 0 : vector<1x128xf32>, vector<16x128xf32>, vector<1x128xf32> -> vector<18x128xf32>
    %43 = vector.extract_strided_slice %42 {offsets = [0, 0], sizes = [16, 128], strides = [1, 1]} : vector<18x128xf32> to vector<16x128xf32>
    %c0_25 = arith.constant 0 : index
    %c0_26 = arith.constant 0 : index
    %c0_27 = arith.constant 0 : index
    %44 = vector.load %arg3[%c0_25, %c0_26, %c0_27] : memref<3x128x128xf32, #tpu.memory_space<vmem>>, vector<1x128x128xf32>
    %45 = vector.shape_cast %44 : vector<1x128x128xf32> to vector<128x128xf32>
    %cst_28 = arith.constant dense<0.000000e+00> : vector<16x128xf32>
    %46 = tpu.matmul %43, %45, %cst_28 {dimension_numbers = #tpu.dot_dimension_numbers<[1], [0], [0], [1], [0, 0, 1, 1], [], []>} : vector<16x128xf32>, vector<128x128xf32>, vector<16x128xf32> -> vector<16x128xf32>
    %47 = vector.extract_strided_slice %42 {offsets = [1, 0], sizes = [16, 128], strides = [1, 1]} : vector<18x128xf32> to vector<16x128xf32>
    %c1 = arith.constant 1 : index
    %c0_29 = arith.constant 0 : index
    %c0_30 = arith.constant 0 : index
    %48 = vector.load %arg3[%c1, %c0_29, %c0_30] : memref<3x128x128xf32, #tpu.memory_space<vmem>>, vector<1x128x128xf32>
    %49 = vector.shape_cast %48 : vector<1x128x128xf32> to vector<128x128xf32>
    %cst_31 = arith.constant dense<0.000000e+00> : vector<16x128xf32>
    %50 = tpu.matmul %47, %49, %cst_31 {dimension_numbers = #tpu.dot_dimension_numbers<[1], [0], [0], [1], [0, 0, 1, 1], [], []>} : vector<16x128xf32>, vector<128x128xf32>, vector<16x128xf32> -> vector<16x128xf32>
    %51 = arith.addf %46, %50 : vector<16x128xf32>
    %52 = vector.extract_strided_slice %42 {offsets = [2, 0], sizes = [16, 128], strides = [1, 1]} : vector<18x128xf32> to vector<16x128xf32>
    %c2 = arith.constant 2 : index
    %c0_32 = arith.constant 0 : index
    %c0_33 = arith.constant 0 : index
    %53 = vector.load %arg3[%c2, %c0_32, %c0_33] : memref<3x128x128xf32, #tpu.memory_space<vmem>>, vector<1x128x128xf32>
    %54 = vector.shape_cast %53 : vector<1x128x128xf32> to vector<128x128xf32>
    %cst_34 = arith.constant dense<0.000000e+00> : vector<16x128xf32>
    %55 = tpu.matmul %52, %54, %cst_34 {dimension_numbers = #tpu.dot_dimension_numbers<[1], [0], [0], [1], [0, 0, 1, 1], [], []>} : vector<16x128xf32>, vector<128x128xf32>, vector<16x128xf32> -> vector<16x128xf32>
    %56 = arith.addf %51, %55 : vector<16x128xf32>
    %c0_35 = arith.constant 0 : index
    %c0_36 = arith.constant 0 : index
    %c0_37 = arith.constant 0 : index
    %57 = vector.load %arg6[%c0_35, %c0_36, %c0_37] : memref<1x16x128xf32, #tpu.memory_space<vmem>>, vector<1x16x128xf32>
    %58 = vector.shape_cast %57 : vector<1x16x128xf32> to vector<16x128xf32>
    %59 = vector.shape_cast %56 : vector<16x128xf32> to vector<1x16x128xf32>
    tpu.vector_store %arg6[%c0_35, %c0_36, %c0_37], %59 {strides = array<i32>} : memref<1x16x128xf32, #tpu.memory_space<vmem>>, vector<1x16x128xf32>,
    %cst_38 = arith.constant dense<0.000000e+00> : vector<128xf32>
    %60 = vector.multi_reduction <add>, %56, %cst_38 [0] : vector<16x128xf32> to vector<128xf32>
    %61 = vector.shape_cast %60 : vector<128xf32> to vector<1x128xf32>
    %62 = arith.mulf %56, %56 : vector<16x128xf32>
    %cst_39 = arith.constant dense<0.000000e+00> : vector<128xf32>
    %63 = vector.multi_reduction <add>, %62, %cst_39 [0] : vector<16x128xf32> to vector<128xf32>
    %64 = vector.shape_cast %63 : vector<128xf32> to vector<1x128xf32>
    %65 = tpu.concatenate %61, %64 in 0 : vector<1x128xf32>, vector<1x128xf32> -> vector<2x128xf32>
    %c0_i32_40 = arith.constant 0 : i32
    %66 = arith.cmpi eq, %arg1, %c0_i32_40 : i32
    %67 = arith.extui %66 : i1 to i32
    %c0_i32_41 = arith.constant 0 : i32
    %68 = arith.cmpi ne, %67, %c0_i32_41 : i32
    scf.if %68 {
      %c0_44 = arith.constant 0 : index
      %c0_45 = arith.constant 0 : index
      %c0_46 = arith.constant 0 : index
      %72 = vector.load %arg7[%c0_44, %c0_45, %c0_46] : memref<1x2x128xf32, #tpu.memory_space<vmem>>, vector<1x2x128xf32>
      %73 = vector.shape_cast %72 : vector<1x2x128xf32> to vector<2x128xf32>
      %74 = vector.shape_cast %65 : vector<2x128xf32> to vector<1x2x128xf32>
      tpu.vector_store %arg7[%c0_44, %c0_45, %c0_46], %74 {strides = array<i32>} : memref<1x2x128xf32, #tpu.memory_space<vmem>>, vector<1x2x128xf32>,
    } else {
    }
    %c0_i32_42 = arith.constant 0 : i32
    %69 = arith.cmpi sgt, %arg1, %c0_i32_42 : i32
    %70 = arith.extui %69 : i1 to i32
    %c0_i32_43 = arith.constant 0 : i32
    %71 = arith.cmpi ne, %70, %c0_i32_43 : i32
    scf.if %71 {
      %c0_44 = arith.constant 0 : index
      %c0_45 = arith.constant 0 : index
      %c0_46 = arith.constant 0 : index
      %72 = vector.load %arg7[%c0_44, %c0_45, %c0_46] : memref<1x2x128xf32, #tpu.memory_space<vmem>>, vector<1x2x128xf32>
      %73 = vector.shape_cast %72 : vector<1x2x128xf32> to vector<2x128xf32>
      %74 = arith.addf %73, %65 : vector<2x128xf32>
      %c0_47 = arith.constant 0 : index
      %c0_48 = arith.constant 0 : index
      %c0_49 = arith.constant 0 : index
      %75 = vector.load %arg7[%c0_47, %c0_48, %c0_49] : memref<1x2x128xf32, #tpu.memory_space<vmem>>, vector<1x2x128xf32>
      %76 = vector.shape_cast %75 : vector<1x2x128xf32> to vector<2x128xf32>
      %77 = vector.shape_cast %74 : vector<2x128xf32> to vector<1x2x128xf32>
      tpu.vector_store %arg7[%c0_47, %c0_48, %c0_49], %77 {strides = array<i32>} : memref<1x2x128xf32, #tpu.memory_space<vmem>>, vector<1x2x128xf32>,
    } else {
    }
    return
  }
  func.func @transform_0(%arg0: i32, %arg1: i32) -> (i32, i32, i32) {
    %c0_i32 = arith.constant 0 : i32
    %c0_i32_0 = arith.constant 0 : i32
    %c0_i32_1 = arith.constant 0 : i32
    return %arg0, %c0_i32, %c0_i32_0 : i32, i32, i32
  }
  func.func @transform_1(%arg0: i32, %arg1: i32) -> (i32, i32, i32) {
    %c0_i32 = arith.constant 0 : i32
    %c0_i32_0 = arith.constant 0 : i32
    %c0_i32_1 = arith.constant 0 : i32
    %c0_i32_2 = arith.constant 0 : i32
    return %c0_i32, %c0_i32_0, %c0_i32_1 : i32, i32, i32
  }
  func.func @transform_2(%arg0: i32, %arg1: i32) -> (i32, i32) {
    %c0_i32 = arith.constant 0 : i32
    %c0_i32_0 = arith.constant 0 : i32
    %c0_i32_1 = arith.constant 0 : i32
    return %c0_i32, %c0_i32_0 : i32, i32
  }
  func.func @transform_3(%arg0: i32, %arg1: i32) -> (i32, i32) {
    %c0_i32 = arith.constant 0 : i32
    %c0_i32_0 = arith.constant 0 : i32
    %c0_i32_1 = arith.constant 0 : i32
    return %c0_i32, %c0_i32_0 : i32, i32
  }
  func.func @transform_4(%arg0: i32, %arg1: i32) -> (i32, i32, i32) {
    %c0_i32 = arith.constant 0 : i32
    %c0_i32_0 = arith.constant 0 : i32
    return %arg0, %arg1, %c0_i32 : i32, i32, i32
  }
  func.func @transform_5(%arg0: i32, %arg1: i32) -> (i32, i32, i32) {
    %c0_i32 = arith.constant 0 : i32
    %c0_i32_0 = arith.constant 0 : i32
    %c0_i32_1 = arith.constant 0 : i32
    return %arg0, %c0_i32, %c0_i32_0 : i32, i32, i32
  }
}

</mosaic_0001>

<bundles_post_ra>
// kernel: tile.18
= control target key start
LH: loop header
LB: loop body
LE: loop exit
PB: predicated region body
PF: predicated region fallthrough
CT: control target
= control target key end

     0   :  { %s28_s0 = inlined_call_operand.vmem [shape: f32[8], index: 0, kind: input, shape index: {}]   ;;  %s29_s1 = inlined_call_operand.vmem [shape: f32[16,8], index: 1, kind: output, shape index: {}]  }
   0x1   :  { %v4_v0 = vld [vmem:[%s28_s0] ss:$0 sm:$0xff] }
   0x2   :  { %5 = vst [vmem:[%s29_s1] sm:$0xff] %v4_v0  ;;  %8 = vst [vmem:[%s29_s1 + $0x8] sm:$0xff] %v4_v0 }

// kernel: tile.19
= control target key start
LH: loop header
LB: loop body
LE: loop exit
PB: predicated region body
PF: predicated region fallthrough
CT: control target
= control target key end

     0   :  { %s133_s10 = smov 120   ;;  %s134_s11 = smov 104   ;;  %vm3_vm0 = vcmask 64512   ;;  %vm9_vm1 = vcmask 1048512   ;;  %vm15_vm2 = vcmask 982912   ;;  %vm21_vm3 = vcmask 917312   ;;  %s209_s0 = inlined_call_operand.vmem [shape: f32[16,8], index: 0, kind: input, shape index: {}]   ;;  %s210_s1 = inlined_call_operand.vmem [shape: f32[1,128], index: 1, kind: output, shape index: {}]  }
   0x1   :  { %v103_v0 = vld [vmem:[%s209_s0 + $0xf] sm:$0x1]   ;;  %v105_v1 = vld [vmem:[%s209_s0 + $0xd] sm:$0x1]   ;;  %v104_v2 = vld [vmem:[%s209_s0 + $0xe] sm:$0x1]  }
   0x2   :  { %7 = vrot.lane.b32.xlu0 %v103_v0, %s133_s10  ;;  %19 = vrot.lane.b32.xlu1 %v105_v1, %s134_s11  ;;  %v106_v3 = vld [vmem:[%s209_s0 + $0xc] sm:$0x1]   ;;  %s135_s16 = smov 112   ;;  %s136_s17 = smov 96   ;;  %v107_v4 = vld [vmem:[%s209_s0 + $0xb] sm:$0x1]  }
   0x3   :  { %v108_v5 = vld [vmem:[%s209_s0 + $0xa] sm:$0x1]   ;;  %v2_v6 = vld [vmem:[%s209_s0] sm:$0x1]   ;;  %s137_s24 = smov 88   ;;  %s138_s25 = smov 80  }
   0x4   :  { %4 = vst.msk [vmem:[#allocation0] sm:$0x1] %vm3_vm0, %v2_v6   ;;  %v109_v7 = vld [vmem:[%s209_s0 + $0x9] sm:$0x1]   ;;  %v110_v8 = vld [vmem:[%s209_s0 + $0x8] sm:$0x1]  }
   0x5   :  { %s139_s30 = smov 72   ;;  %s140_s2 = smov 64   ;;  %v111_v9 = vld [vmem:[%s209_s0 + $0x7] sm:$0x1]   ;;  %v112_v10 = vld [vmem:[%s209_s0 + $0x6] sm:$0x1]  }
   0x6   :  { %13 = vrot.lane.b32.xlu0 %v104_v2, %s135_s16  ;;  %25 = vrot.lane.b32.xlu1 %v106_v3, %s136_s17  ;;  %s141_s7 = smov 56   ;;  %s142_s8 = smov 48   ;;  %v113_v11 = vld [vmem:[%s209_s0 + $0x5] sm:$0x1]   ;;  %v114_v12 = vld [vmem:[%s209_s0 + $0x4] sm:$0x1]  }
   0x7   :  { %s143_s13 = smov 40   ;;  %s144_s14 = smov 32   ;;  %v115_v13 = vld [vmem:[%s209_s0 + $0x3] sm:$0x1]   ;;  %v116_v14 = vld [vmem:[%s209_s0 + $0x2] sm:$0x1]  }
   0x8   :  { %s145_s19 = smov 24   ;;  %s146_s20 = smov 16   ;;  %v117_v15 = vld [vmem:[%s209_s0 + $0x1] sm:$0x1]   ;;  %vm27_vm4 = vcmask 851712   ;;  %vm33_vm5 = vcmask 786112  }
   0x9   :  { %s147_s0 = smov 8   ;;  %vm39_vm6 = vcmask 720512   ;;  %vm45_vm7 = vcmask 654912   ;;  %vm51_vm8 = vcmask 589312   ;;  %vm57_vm9 = vcmask 523712  }
   0xa   :  { %31 = vrot.lane.b32.xlu0 %v107_v4, %s137_s24  ;;  %37 = vrot.lane.b32.xlu1 %v108_v5, %s138_s25  ;;  %vm63_vm10 = vcmask 458112   ;;  %vm69_vm11 = vcmask 392512   ;;  %vm75_vm12 = vcmask 326912   ;;  %vm81_vm13 = vcmask 261312  }
   0xb   :  { %vm87_vm14 = vcmask 195712   ;;  %vm93_vm15 = vcmask 130112  }
   0xe   :  { %43 = vrot.lane.b32.xlu0 %v109_v7, %s139_s30  ;;  %49 = vrot.lane.b32.xlu1 %v110_v8, %s140_s2 }
  0x12   :  { %55 = vrot.lane.b32.xlu0 %v111_v9, %s141_s7  ;;  %61 = vrot.lane.b32.xlu1 %v112_v10, %s142_s8 }
  0x16   :  { %67 = vrot.lane.b32.xlu0 %v113_v11, %s143_s13  ;;  %73 = vrot.lane.b32.xlu1 %v114_v12, %s144_s14 }
  0x1a   :  { %79 = vrot.lane.b32.xlu0 %v115_v13, %s145_s19  ;;  %85 = vrot.lane.b32.xlu1 %v116_v14, %s146_s20 }
  0x1e   :  { %91 = vrot.lane.b32.xlu0 %v117_v15, %s147_s0 }
  0x74   :  { %v8_v16 = vpop.permute.xlu0 %7   ;;  %v20_v17 = vpop.permute.xlu1 %19  }
  0x75   :  { %10 = vst.msk [vmem:[#allocation0] sm:$0x1] %vm9_vm1, %v8_v16  }
  0x78   :  { %v14_v18 = vpop.permute.xlu0 %13   ;;  %v26_v19 = vpop.permute.xlu1 %25  }
  0x79   :  { %16 = vst.msk [vmem:[#allocation0] sm:$0x1] %vm15_vm2, %v14_v18  }
  0x7a   :  { %22 = vst.msk [vmem:[#allocation0] sm:$0x1] %vm21_vm3, %v20_v17  }
  0x7b   :  { %28 = vst.msk [vmem:[#allocation0] sm:$0x1] %vm27_vm4, %v26_v19  }
  0x7c   :  { %v32_v20 = vpop.permute.xlu0 %31   ;;  %v38_v21 = vpop.permute.xlu1 %37  }
  0x7d   :  { %34 = vst.msk [vmem:[#allocation0] sm:$0x1] %vm33_vm5, %v32_v20  }
  0x7e   :  { %40 = vst.msk [vmem:[#allocation0] sm:$0x1] %vm39_vm6, %v38_v21  }
  0x80   :  { %v44_v22 = vpop.permute.xlu0 %43   ;;  %v50_v23 = vpop.permute.xlu1 %49  }
  0x81   :  { %46 = vst.msk [vmem:[#allocation0] sm:$0x1] %vm45_vm7, %v44_v22  }
  0x82   :  { %52 = vst.msk [vmem:[#allocation0] sm:$0x1] %vm51_vm8, %v50_v23  }
  0x84   :  { %v56_v24 = vpop.permute.xlu0 %55   ;;  %v62_v25 = vpop.permute.xlu1 %61  }
  0x85   :  { %58 = vst.msk [vmem:[#allocation0] sm:$0x1] %vm57_vm9, %v56_v24  }
  0x86   :  { %64 = vst.msk [vmem:[#allocation0] sm:$0x1] %vm63_vm10, %v62_v25  }
  0x88   :  { %v68_v26 = vpop.permute.xlu0 %67   ;;  %v74_v27 = vpop.permute.xlu1 %73  }
  0x89   :  { %70 = vst.msk [vmem:[#allocation0] sm:$0x1] %vm69_vm11, %v68_v26  }
  0x8a   :  { %76 = vst.msk [vmem:[#allocation0] sm:$0x1] %vm75_vm12, %v74_v27  }
  0x8c   :  { %v80_v28 = vpop.permute.xlu0 %79   ;;  %v86_v29 = vpop.permute.xlu1 %85  }
  0x8d   :  { %82 = vst.msk [vmem:[#allocation0] sm:$0x1] %vm81_vm13, %v80_v28  }
  0x8e   :  { %88 = vst.msk [vmem:[#allocation0] sm:$0x1] %vm87_vm14, %v86_v29  }
  0x90   :  { %v92_v30 = vpop.permute.xlu0 %91  }
  0x91   :  { %94 = vst.msk [vmem:[#allocation0] sm:$0x1] %vm93_vm15, %v92_v30  }
  0x98   :  { %v99_v31 = vld [vmem:[#allocation0] sm:$0x1] }
  0x99   :  { %102 = vst [vmem:[%s210_s1] sm:$0x1] %v99_v31 }

// kernel: double_conv.2
= control target key start
LH: loop header
LB: loop body
LE: loop exit
PB: predicated region body
PF: predicated region fallthrough
CT: control target
= control target key end

     0   :  { %s863_s12 = smov 0   ;;  %s865_s13 = smov 0   ;;  %s993_s0 = inlined_call_operand.vmem [shape: f32[2,16,64], index: 0, kind: input, shape index: {}]   ;;  %s994_s1 = inlined_call_operand.vmem [shape: f32[3,64,128], index: 1, kind: input, shape index: {}]   ;;  %s995_s2 = inlined_call_operand.vmem [shape: f32[2,16,128], index: 2, kind: output, shape index: {0}]   ;;  %s996_s3 = inlined_call_operand.vmem [shape: f32[2,2,128], index: 3, kind: output, shape index: {1}]  }
   0x1   :  { %s867_s14 = smov 0  }
   0x2 LB: > { %s26_s15 = sadd.s32 1, %s836_s13  ;;  %p673_p0 = scmp.ge.s32.totalorder %s840_s14, 1  ;;  %s840_s14 = sphi %s867_s14, %s14_s14   ;;  %s836_s13 = sphi %s865_s13, %s998_s13   ;;  %s832_s12 = sphi %s863_s12, %s997_s12  }
   0x3   : > { %p28_p1 = scmp.ge.s32.totalorder %s26_s15, 2  ;;  %p154_p2 = scmp.lt.s32.totalorder %s840_s14, 3 }
   0x5   : > { %s1000_s15 = smov (%p28_p1, %s26_s15), 0  ;;  %p155_p3 = pnand %p673_p0, %p154_p2 }
   0x6   : > { %p186_p4 = scmp.lt.s32.totalorder (!%p155_p3), %s832_s12, 1 }
   0x7   : > { %158 = sbr.rel (%p155_p3) target bundleno = 262 (0x106), region = 28 }
   0xc   : > { %v687_v0 = vld [vmem:[%s994_s1 + $0x78] sm:$0xff]  ;;  %v686_v2 = vld [vmem:[%s994_s1 + $0x70] sm:$0xff]  ;;  %v685_v4 = vld [vmem:[%s994_s1 + $0x68] sm:$0xff]  ;;  %s1002_s12 = smov (!%p186_p4, %s832_s12), 1  ;;  %v842_v9 = vmov 0.0   ;;  %vm231_vm0 = vcmask 1040384  }
   0xd   : > { %v249_v1 = vld [vmem:[%s994_s1 + $0x38] sm:$0xff]  ;;  %736 = vmatprep.subr.mxu0 %v687_v0  ;;  %v248_v3 = vld [vmem:[%s994_s1 + $0x30] sm:$0xff]  ;;  %v247_v5 = vld [vmem:[%s994_s1 + $0x28] sm:$0xff]  ;;  %s704_s5 = sshll.u32 %s1002_s12, 4  ;;  %v238_v10 = vrot.slane %v842_v9, 7  ;;  %vm261_vm1 = vcmask 1046528  }
   0xe   : > { %755 = vmatprep.subr.mxu1 %v249_v1  ;;  %737 = vmatpush3.msra.mxu0 %v687_v0  ;;  %v684_v6 = vld [vmem:[%s994_s1 + $0x60] sm:$0xff]  ;;  %v683_v8 = vld [vmem:[%s994_s1 + $0x58] sm:$0xff]  ;;  %s190_s10 = scalar_lea.vmem %s993_s0, %s704_s5  ;;  %v682_v16 = vld [vmem:[%s994_s1 + $0x50] sm:$0xff]  ;;  %vm267_vm2 = vcmask 523264   ;;  %vm435_vm3 = vcmask 1045504   ;;  %s199_s25 = scalar_lea.vmem %s995_s2, %s704_s5 }
   0xf   : > { %756 = vmatpush3.msra.mxu1 %v249_v1  ;;  %738 = vmatprep.subr.mxu0 %v686_v2  ;;  %v246_v7 = vld [vmem:[%s994_s1 + $0x20] sm:$0xff]  ;;  %v245_v11 = vld [vmem:[%s994_s1 + $0x18] sm:$0xff]  ;;  %v218_v13 = vld [vmem:[%s190_s10 + $0x8] sm:$0xff]  ;;  %s678_s5 = sshll.u32 %s1002_s12, 1 }
  0x10   : > { %757 = vmatprep.subr.mxu1 %v248_v3  ;;  %739 = vmatpush3.msra.mxu0 %v686_v2  ;;  %v217_v12 = vld [vmem:[%s190_s10] sm:$0xff]  ;;  %v233_v15 = vrot.slane %v218_v13, 7  ;;  %v244_v17 = vld [vmem:[%s994_s1 + $0x10] sm:$0xff]  ;;  %v681_v21 = vld [vmem:[%s994_s1 + $0x48] sm:$0xff]  ;;  %s204_s28 = scalar_lea.vmem %s996_s3, %s678_s5 }
  0x11   : > { %758 = vmatpush3.msra.mxu1 %v248_v3  ;;  %740 = vmatprep.subr.mxu0 %v685_v4  ;;  %v232_v14 = vrot.slane %v217_v12, 7  ;;  %v243_v22 = vld [vmem:[%s994_s1 + $0x8] sm:$0xff]  ;;  %v680_v26 = vld [vmem:[%s994_s1 + $0x40] sm:$0xff]  ;;  %v699_v32 = vld [vmem:[%s994_s1 + $0xb8] sm:$0xff] }
  0x12   : > { %759 = vmatprep.subr.mxu1 %v247_v5  ;;  %741 = vmatpush3.msra.mxu0 %v685_v4  ;;  %v241_v20 = vsel %vm231_vm0, %v233_v15, %v238_v10  ;;  %v242_v27 = vld [vmem:[%s994_s1] sm:$0xff]  ;;  %v698_v34 = vld [vmem:[%s994_s1 + $0xb0] sm:$0xff]  ;;  %v697_v35 = vld [vmem:[%s994_s1 + $0xa8] sm:$0xff] }
  0x13   : > { %760 = vmatpush3.msra.mxu1 %v247_v5  ;;  %742 = vmatprep.subr.mxu0 %v684_v6  ;;  %v234_v18 = vsel %vm231_vm0, %v232_v14, %v233_v15  ;;  %v240_v19 = vsel %vm231_vm0, 0.0, %v232_v14  ;;  %v265_v25 = vrot.slane %v241_v20, 1  ;;  %v696_v36 = vld [vmem:[%s994_s1 + $0xa0] sm:$0xff]  ;;  %v695_v37 = vld [vmem:[%s994_s1 + $0x98] sm:$0xff]  ;;  %v694_v38 = vld [vmem:[%s994_s1 + $0x90] sm:$0xff]  ;;  %v439_v39 = vrot.slane %v241_v20, 2 }
  0x14   : > { %761 = vmatprep.subr.mxu1 %v246_v7  ;;  %743 = vmatpush3.msra.mxu0 %v684_v6  ;;  %v262_v23 = vrot.slane %v240_v19, 1  ;;  %v263_v24 = vrot.slane %v234_v18, 1  ;;  %v436_v28 = vrot.slane %v240_v19, 2  ;;  %v437_v29 = vrot.slane %v234_v18, 2  ;;  %v693_v40 = vld [vmem:[%s994_s1 + $0x88] sm:$0xff]  ;;  %v692_v41 = vld [vmem:[%s994_s1 + $0x80] sm:$0xff] }
  0x15   : > { %762 = vmatpush3.msra.mxu1 %v246_v7  ;;  %744 = vmatprep.subr.mxu0 %v683_v8 }
  0x16   : > { %763 = vmatprep.subr.mxu1 %v245_v11  ;;  %745 = vmatpush3.msra.mxu0 %v683_v8  ;;  %v264_v30 = vsel %vm261_vm1, %v262_v23, %v263_v24  ;;  %v266_v31 = vsel %vm261_vm1, %v263_v24, %v265_v25  ;;  %v438_v33 = vsel %vm435_vm3, %v436_v28, %v437_v29 }
  0x17   : > { %764 = vmatpush3.msra.mxu1 %v245_v11  ;;  %746 = vmatprep.subr.mxu0 %v682_v16  ;;  %v440_v42 = vsel %vm435_vm3, %v437_v29, %v439_v39 }
  0x18   : > { %765 = vmatprep.subr.mxu1 %v244_v17  ;;  %747 = vmatpush3.msra.mxu0 %v682_v16 }
  0x19   : > { %766 = vmatpush3.msra.mxu1 %v244_v17  ;;  %748 = vmatprep.subr.mxu0 %v681_v21 }
  0x1a   : > { %767 = vmatprep.subr.mxu1 %v243_v22  ;;  %749 = vmatpush3.msra.mxu0 %v681_v21 }
  0x1b   : > { %768 = vmatpush3.msra.mxu1 %v243_v22  ;;  %750 = vmatprep.subr.mxu0 %v680_v26 }
  0x1c   : > { %769 = vmatprep.subr.mxu1 %v242_v27  ;;  %751 = vmatpush3.msra.mxu0 %v680_v26 }
  0x1d   : > { %752 = vmatprep.mubr.msk.f32.mxu0 %vm267_vm2, %v264_v30  ;;  %770 = vmatpush3.msra.mxu1 %v242_v27 }
  0x1e   : > { %771 = vmatprep.mubr.msk.f32.mxu1 %vm267_vm2, %v240_v19  ;;  %753 = vmatmul.mubr.msk.f32.vlgmr.msra.gmra.mxu0 %vm267_vm2, %v266_v31 }
  0x1f   : > { %772 = vmatmul.mubr.msk.f32.vlgmr.msra.gmra.mxu1 %vm267_vm2, %v234_v18  ;;  %774 = vmatprep.subr.mxu0 %v699_v32 }
  0x20   : > { %790 = vmatprep.mubr.msk.f32.mxu0 %vm267_vm2, %v438_v33  ;;  %775 = vmatpush3.msra.mxu0 %v699_v32 }
  0x21   : > { %776 = vmatprep.subr.mxu0 %v698_v34 }
  0x22   : > { %777 = vmatpush3.msra.mxu0 %v698_v34 }
  0x23   : > { %778 = vmatprep.subr.mxu0 %v697_v35 }
  0x24   : > { %779 = vmatpush3.msra.mxu0 %v697_v35 }
  0x25   : > { %780 = vmatprep.subr.mxu0 %v696_v36 }
  0x26   : > { %781 = vmatpush3.msra.mxu0 %v696_v36 }
  0x27   : > { %782 = vmatprep.subr.mxu0 %v695_v37 }
  0x28   : > { %783 = vmatpush3.msra.mxu0 %v695_v37 }
  0x29   : > { %784 = vmatprep.subr.mxu0 %v694_v38 }
  0x2a   : > { %785 = vmatpush3.msra.mxu0 %v694_v38 }
  0x2b   : > { %786 = vmatprep.subr.mxu0 %v693_v40 }
  0x2c   : > { %787 = vmatpush3.msra.mxu0 %v693_v40 }
  0x2d   : > { %788 = vmatprep.subr.mxu0 %v692_v41 }
  0x2e   : > { %789 = vmatpush3.msra.mxu0 %v692_v41 }
  0x2f   : > { %791 = vmatmul.mubr.msk.f32.vlgmr.msra.gmra.mxu0 %vm267_vm2, %v440_v42 }
  0xde   : > { %v754_v43 = vpop.f32.mrf.mxu0 }
  0xdf   : > { %v773_v44 = vpop.f32.mrf.mxu1 }
  0xe0   : > { %v338_v45 = vpop.f32.mrf.mxu0  ;;  %v423_v47 = vadd.f32 %v773_v44, %v754_v43 }
  0xe1   : > { %v417_v46 = vpop.f32.mrf.mxu1 }
  0xe2   : > { %v418_v49 = vadd.f32 %v417_v46, %v338_v45 }
  0xef   : > { %v792_v48 = vpop.f32.mrf.mxu0 }
  0xf0   : > { %v521_v50 = vadd.f32 %v792_v48, %v423_v47 }
  0xf1   : > { %v511_v51 = vpop.f32.mrf.mxu0 }
  0xf2   : > { %523 = vst [vmem:[%s199_s25 + $0x8] sm:$0xff] %v521_v50  ;;  %v520_v52 = vadd.f32 %v511_v51, %v418_v49  ;;  %v532_v53 = vmul.f32 %v521_v50, %v521_v50 }
  0xf4   : > { %522 = vst [vmem:[%s199_s25] sm:$0xff] %v520_v52  ;;  %v524_v54 = vadd.f32 %v521_v50, %v520_v52  ;;  %v531_v55 = vmul.f32 %v520_v52, %v520_v52 }
  0xf6   : > { %v525_v56 = vrot.slane %v524_v54, 4  ;;  %v533_v57 = vadd.f32 %v532_v53, %v531_v55 }
  0xf8   : > { %v526_v58 = vadd.f32 %v525_v56, %v524_v54  ;;  %v534_v59 = vrot.slane %v533_v57, 4 }
  0xfa   : > { %v527_v60 = vrot.slane %v526_v58, 2  ;;  %v535_v61 = vadd.f32 %v534_v59, %v533_v57 }
  0xfc   : > { %v528_v62 = vadd.f32 %v527_v60, %v526_v58  ;;  %v536_v63 = vrot.slane %v535_v61, 2 }
  0xfe   : > { %v529_v0 = vrot.slane %v528_v62, 1  ;;  %v537_v1 = vadd.f32 %v536_v63, %v535_v61 }
 0x100   : > { %v538_v2 = vrot.slane %v537_v1, 1  ;;  %v530_v3 = vadd.f32 %v529_v0, %v528_v62 }
 0x102   : > { %v539_v4 = vadd.f32 %v538_v2, %v537_v1 }
 0x104   : > { %v540_v5 = vsel %vm231_vm0, %v530_v3, %v539_v4 }
 0x105   : > { %545 = vst [vmem:[%s204_s28] sm:$0x3] %v540_v5 }
 0x106 PF: > { %s14_s14 = sadd.s32 1, %s840_s14   ;;  %s997_s12 = smov %s836_s13 }
 0x107   : > { %p11_p5 = scmp.ge.s32.totalorder %s14_s14, 4   ;;  %s998_s13 = smov %s1000_s15 }
 0x109   :  { %13 = sbr.rel (!%p11_p5) target bundleno = 2 (0x2), region = 83 }

// kernel: double_conv.3
= control target key start
LH: loop header
LB: loop body
LE: loop exit
PB: predicated region body
PF: predicated region fallthrough
CT: control target
= control target key end

     0   :  { %s1055_s18 = smov 0   ;;  %s1057_s19 = smov 0   ;;  %s1271_s0 = inlined_call_operand.vmem [shape: f32[2,16,128], index: 0, kind: input, shape index: {}]   ;;  %s1272_s1 = inlined_call_operand.vmem [shape: f32[3,128,128], index: 1, kind: input, shape index: {}]   ;;  %s1273_s2 = inlined_call_operand.vmem [shape: f32[1,128], index: 2, kind: input, shape index: {}]   ;;  %s1274_s3 = inlined_call_operand.vmem [shape: f32[1,128], index: 3, kind: input, shape index: {}]   ;;  %s1275_s4 = inlined_call_operand.vmem [shape: f32[2,16,128], index: 4, kind: output, shape index: {0}]   ;;  %s1276_s5 = inlined_call_operand.vmem [shape: f32[2,2,128], index: 5, kind: output, shape index: {1}]  }
   0x1   :  { %s1059_s20 = smov 0  }
   0x2 LB: > { %s28_s21 = sadd.s32 1, %s1018_s19  ;;  %p769_p0 = scmp.ge.s32.totalorder %s1022_s20, 1  ;;  %s1022_s20 = sphi %s1059_s20, %s16_s20   ;;  %s1018_s19 = sphi %s1057_s19, %s1278_s19   ;;  %s1014_s18 = sphi %s1055_s18, %s1277_s18  }
   0x3   : > { %p30_p1 = scmp.ge.s32.totalorder %s28_s21, 2  ;;  %p204_p2 = scmp.lt.s32.totalorder %s1022_s20, 3 }
   0x5   : > { %s1280_s21 = smov (%p30_p1, %s28_s21), 0  ;;  %p205_p3 = pnand %p769_p0, %p204_p2 }
   0x6   : > { %p240_p4 = scmp.lt.s32.totalorder (!%p205_p3), %s1014_s18, 1 }
   0x7   : > { %208 = sbr.rel (%p205_p3) target bundleno = 294 (0x126), region = 36 }
   0xc   : > { %v791_v0 = vld [vmem:[%s1272_s1 + $0xf8] sm:$0xff]  ;;  %v790_v2 = vld [vmem:[%s1272_s1 + $0xf0] sm:$0xff]  ;;  %v789_v4 = vld [vmem:[%s1272_s1 + $0xe8] sm:$0xff]  ;;  %s1282_s18 = smov (!%p240_p4, %s1014_s18), 1  ;;  %vm311_vm0 = vcmask 1040384   ;;  %v1024_v36 = vmov 0.0  }
   0xd   : > { %v338_v1 = vld [vmem:[%s1272_s1 + $0x78] sm:$0xff]  ;;  %870 = vmatprep.subr.mxu0 %v791_v0  ;;  %v337_v3 = vld [vmem:[%s1272_s1 + $0x70] sm:$0xff]  ;;  %v336_v5 = vld [vmem:[%s1272_s1 + $0x68] sm:$0xff]  ;;  %s812_s13 = sshll.u32 %s1282_s18, 4  ;;  %v319_v37 = vrot.slane %v1024_v36, 7  ;;  %vm358_vm1 = vcmask 1046528  }
   0xe   : > { %905 = vmatprep.subr.mxu1 %v338_v1  ;;  %871 = vmatpush3.msra.mxu0 %v791_v0  ;;  %v788_v6 = vld [vmem:[%s1272_s1 + $0xe0] sm:$0xff]  ;;  %v787_v8 = vld [vmem:[%s1272_s1 + $0xd8] sm:$0xff]  ;;  %v786_v10 = vld [vmem:[%s1272_s1 + $0xd0] sm:$0xff]  ;;  %s244_s28 = scalar_lea.vmem %s1271_s0, %s812_s13  ;;  %vm533_vm2 = vcmask 1045504   ;;  %s253_s27 = scalar_lea.vmem %s1275_s4, %s812_s13 }
   0xf   : > { %906 = vmatpush3.msra.mxu1 %v338_v1  ;;  %872 = vmatprep.subr.mxu0 %v790_v2  ;;  %v335_v7 = vld [vmem:[%s1272_s1 + $0x60] sm:$0xff]  ;;  %v334_v9 = vld [vmem:[%s1272_s1 + $0x58] sm:$0xff]  ;;  %v333_v11 = vld [vmem:[%s1272_s1 + $0x50] sm:$0xff]  ;;  %s774_s13 = sshll.u32 %s1282_s18, 1 }
  0x10   : > { %907 = vmatprep.subr.mxu1 %v337_v3  ;;  %873 = vmatpush3.msra.mxu0 %v790_v2  ;;  %v785_v12 = vld [vmem:[%s1272_s1 + $0xc8] sm:$0xff]  ;;  %v814_v14 = vld [vmem:[%s1273_s2] ss:$0 sm:$0xff]  ;;  %v783_v22 = vld [vmem:[%s1272_s1 + $0xb8] sm:$0xff]  ;;  %s258_s30 = scalar_lea.vmem %s1276_s5, %s774_s13 }
  0x11   : > { %908 = vmatpush3.msra.mxu1 %v337_v3  ;;  %874 = vmatprep.subr.mxu0 %v789_v4  ;;  %v332_v13 = vld [vmem:[%s1272_s1 + $0x48] sm:$0xff]  ;;  %v815_v15 = vld [vmem:[%s1274_s3] ss:$0 sm:$0xff]  ;;  %v330_v23 = vld [vmem:[%s1272_s1 + $0x38] sm:$0xff] }
  0x12   : > { %909 = vmatprep.subr.mxu1 %v336_v5  ;;  %875 = vmatpush3.msra.mxu0 %v789_v4  ;;  %v276_v16 = vld [vmem:[%s244_s28] sm:$0xff]  ;;  %v277_v17 = vld [vmem:[%s244_s28 + $0x8] sm:$0xff]  ;;  %v782_v26 = vld [vmem:[%s1272_s1 + $0xb0] sm:$0xff] }
  0x13   : > { %910 = vmatpush3.msra.mxu1 %v336_v5  ;;  %876 = vmatprep.subr.mxu0 %v788_v6  ;;  %v784_v18 = vld [vmem:[%s1272_s1 + $0xc0] sm:$0xff]  ;;  %v284_v20 = vmul.f32 %v814_v14, %v276_v16  ;;  %v285_v21 = vmul.f32 %v814_v14, %v277_v17  ;;  %v329_v27 = vld [vmem:[%s1272_s1 + $0x30] sm:$0xff]  ;;  %v781_v30 = vld [vmem:[%s1272_s1 + $0xa8] sm:$0xff] }
  0x14   : > { %911 = vmatprep.subr.mxu1 %v335_v7  ;;  %877 = vmatpush3.msra.mxu0 %v788_v6  ;;  %v331_v19 = vld [vmem:[%s1272_s1 + $0x40] sm:$0xff]  ;;  %v328_v31 = vld [vmem:[%s1272_s1 + $0x28] sm:$0xff]  ;;  %v779_v38 = vld [vmem:[%s1272_s1 + $0x98] sm:$0xff] }
  0x15   : > { %912 = vmatpush3.msra.mxu1 %v335_v7  ;;  %878 = vmatprep.subr.mxu0 %v787_v8  ;;  %v292_v24 = vadd.f32 %v815_v15, %v284_v20  ;;  %v293_v25 = vadd.f32 %v815_v15, %v285_v21  ;;  %v780_v34 = vld [vmem:[%s1272_s1 + $0xa0] sm:$0xff]  ;;  %v326_v39 = vld [vmem:[%s1272_s1 + $0x18] sm:$0xff]  ;;  %v778_v42 = vld [vmem:[%s1272_s1 + $0x90] sm:$0xff] }
  0x16   : > { %913 = vmatprep.subr.mxu1 %v334_v9  ;;  %879 = vmatpush3.msra.mxu0 %v787_v8  ;;  %v327_v35 = vld [vmem:[%s1272_s1 + $0x20] sm:$0xff]  ;;  %v325_v43 = vld [vmem:[%s1272_s1 + $0x10] sm:$0xff]  ;;  %v777_v47 = vld [vmem:[%s1272_s1 + $0x88] sm:$0xff] }
  0x17   : > { %914 = vmatpush3.msra.mxu1 %v334_v9  ;;  %880 = vmatprep.subr.mxu0 %v786_v10  ;;  %v294_v28 = vmax.f32 %v292_v24, 0.0  ;;  %v295_v29 = vmax.f32 %v293_v25, 0.0  ;;  %v324_v48 = vld [vmem:[%s1272_s1 + $0x8] sm:$0xff]  ;;  %v776_v50 = vld [vmem:[%s1272_s1 + $0x80] sm:$0xff]  ;;  %vm792_vm3 = vmneg %vm311_vm0 }
  0x18   : > { %915 = vmatprep.subr.mxu1 %v333_v11  ;;  %881 = vmatpush3.msra.mxu0 %v786_v10  ;;  %v323_v51 = vld [vmem:[%s1272_s1] sm:$0xff]  ;;  %v809_v56 = vld [vmem:[%s1272_s1 + $0x178] sm:$0xff]  ;;  %v808_v58 = vld [vmem:[%s1272_s1 + $0x170] sm:$0xff] }
  0x19   : > { %916 = vmatpush3.msra.mxu1 %v333_v11  ;;  %882 = vmatprep.subr.mxu0 %v785_v12  ;;  %v312_v32 = vrot.slane %v294_v28, 7  ;;  %v313_v33 = vrot.slane %v295_v29, 7  ;;  %v807_v59 = vld [vmem:[%s1272_s1 + $0x168] sm:$0xff]  ;;  %v806_v60 = vld [vmem:[%s1272_s1 + $0x160] sm:$0xff]  ;;  %v805_v61 = vld [vmem:[%s1272_s1 + $0x158] sm:$0xff] }
  0x1a   : > { %917 = vmatprep.subr.mxu1 %v332_v13  ;;  %883 = vmatpush3.msra.mxu0 %v785_v12  ;;  %v804_v62 = vld [vmem:[%s1272_s1 + $0x150] sm:$0xff]  ;;  %v803_v63 = vld [vmem:[%s1272_s1 + $0x148] sm:$0xff]  ;;  %v802_v0 = vld [vmem:[%s1272_s1 + $0x140] sm:$0xff] }
  0x1b   : > { %918 = vmatpush3.msra.mxu1 %v332_v13  ;;  %884 = vmatprep.subr.mxu0 %v784_v18  ;;  %v1166_v40 = vsel %vm311_vm0, %v312_v32, %v313_v33  ;;  %v321_v41 = vsel %vm311_vm0, 0.0, %v312_v32  ;;  %v1176_v44 = vsel %vm311_vm0, %v313_v33, %v319_v37  ;;  %v801_v1 = vld [vmem:[%s1272_s1 + $0x138] sm:$0xff]  ;;  %v800_v2 = vld [vmem:[%s1272_s1 + $0x130] sm:$0xff]  ;;  %v799_v3 = vld [vmem:[%s1272_s1 + $0x128] sm:$0xff] }
  0x1c   : > { %919 = vmatprep.subr.mxu1 %v331_v19  ;;  %885 = vmatpush3.msra.mxu0 %v784_v18  ;;  %v359_v45 = vrot.slane %v321_v41, 1  ;;  %v360_v46 = vrot.slane %v1166_v40, 1  ;;  %v362_v49 = vrot.slane %v1176_v44, 1  ;;  %v534_v52 = vrot.slane %v321_v41, 2  ;;  %v798_v4 = vld [vmem:[%s1272_s1 + $0x120] sm:$0xff]  ;;  %v797_v5 = vld [vmem:[%s1272_s1 + $0x118] sm:$0xff] }
  0x1d   : > { %920 = vmatpush3.msra.mxu1 %v331_v19  ;;  %886 = vmatprep.subr.mxu0 %v783_v22  ;;  %v535_v53 = vrot.slane %v1166_v40, 2  ;;  %v796_v6 = vld [vmem:[%s1272_s1 + $0x110] sm:$0xff]  ;;  %v795_v7 = vld [vmem:[%s1272_s1 + $0x108] sm:$0xff]  ;;  %v537_v8 = vrot.slane %v1176_v44, 2  ;;  %v794_v9 = vld [vmem:[%s1272_s1 + $0x100] sm:$0xff] }
  0x1e   : > { %921 = vmatprep.subr.mxu1 %v330_v23  ;;  %887 = vmatpush3.msra.mxu0 %v783_v22  ;;  %v361_v54 = vsel %vm358_vm1, %v359_v45, %v360_v46  ;;  %v363_v55 = vsel %vm358_vm1, %v360_v46, %v362_v49 }
  0x1f   : > { %922 = vmatpush3.msra.mxu1 %v330_v23  ;;  %888 = vmatprep.subr.mxu0 %v782_v26  ;;  %v536_v57 = vsel %vm533_vm2, %v534_v52, %v535_v53  ;;  %v538_v10 = vsel %vm533_vm2, %v535_v53, %v537_v8 }
  0x20   : > { %923 = vmatprep.subr.mxu1 %v329_v27  ;;  %889 = vmatpush3.msra.mxu0 %v782_v26 }
  0x21   : > { %924 = vmatpush3.msra.mxu1 %v329_v27  ;;  %890 = vmatprep.subr.mxu0 %v781_v30 }
  0x22   : > { %925 = vmatprep.subr.mxu1 %v328_v31  ;;  %891 = vmatpush3.msra.mxu0 %v781_v30 }
  0x23   : > { %926 = vmatpush3.msra.mxu1 %v328_v31  ;;  %892 = vmatprep.subr.mxu0 %v780_v34 }
  0x24   : > { %927 = vmatprep.subr.mxu1 %v327_v35  ;;  %893 = vmatpush3.msra.mxu0 %v780_v34 }
  0x25   : > { %928 = vmatpush3.msra.mxu1 %v327_v35  ;;  %894 = vmatprep.subr.mxu0 %v779_v38 }
  0x26   : > { %929 = vmatprep.subr.mxu1 %v326_v39  ;;  %895 = vmatpush3.msra.mxu0 %v779_v38 }
  0x27   : > { %930 = vmatpush3.msra.mxu1 %v326_v39  ;;  %896 = vmatprep.subr.mxu0 %v778_v42 }
  0x28   : > { %931 = vmatprep.subr.mxu1 %v325_v43  ;;  %897 = vmatpush3.msra.mxu0 %v778_v42 }
  0x29   : > { %932 = vmatpush3.msra.mxu1 %v325_v43  ;;  %898 = vmatprep.subr.mxu0 %v777_v47 }
  0x2a   : > { %933 = vmatprep.subr.mxu1 %v324_v48  ;;  %899 = vmatpush3.msra.mxu0 %v777_v47 }
  0x2b   : > { %934 = vmatpush3.msra.mxu1 %v324_v48  ;;  %900 = vmatprep.subr.mxu0 %v776_v50 }
  0x2c   : > { %935 = vmatprep.subr.mxu1 %v323_v51  ;;  %901 = vmatpush3.msra.mxu0 %v776_v50 }
  0x2d   : > { %902 = vmatprep.mubr.f32.mxu0 %v361_v54  ;;  %936 = vmatpush3.msra.mxu1 %v323_v51 }
  0x2e   : > { %937 = vmatprep.mubr.msk.f32.mxu1 %vm792_vm3, %v312_v32  ;;  %903 = vmatmul.mubr.f32.vlgmr.msra.gmra.mxu0 %v363_v55 }
  0x2f   : > { %938 = vmatmul.mubr.f32.vlgmr.msra.gmra.mxu1 %v1166_v40  ;;  %940 = vmatprep.subr.mxu0 %v809_v56 }
  0x30   : > { %972 = vmatprep.mubr.f32.mxu0 %v536_v57  ;;  %941 = vmatpush3.msra.mxu0 %v809_v56 }
  0x31   : > { %942 = vmatprep.subr.mxu0 %v808_v58 }
  0x32   : > { %943 = vmatpush3.msra.mxu0 %v808_v58 }
  0x33   : > { %944 = vmatprep.subr.mxu0 %v807_v59 }
  0x34   : > { %945 = vmatpush3.msra.mxu0 %v807_v59 }
  0x35   : > { %946 = vmatprep.subr.mxu0 %v806_v60 }
  0x36   : > { %947 = vmatpush3.msra.mxu0 %v806_v60 }
  0x37   : > { %948 = vmatprep.subr.mxu0 %v805_v61 }
  0x38   : > { %949 = vmatpush3.msra.mxu0 %v805_v61 }
  0x39   : > { %950 = vmatprep.subr.mxu0 %v804_v62 }
  0x3a   : > { %951 = vmatpush3.msra.mxu0 %v804_v62 }
  0x3b   : > { %952 = vmatprep.subr.mxu0 %v803_v63 }
  0x3c   : > { %953 = vmatpush3.msra.mxu0 %v803_v63 }
  0x3d   : > { %954 = vmatprep.subr.mxu0 %v802_v0 }
  0x3e   : > { %955 = vmatpush3.msra.mxu0 %v802_v0 }
  0x3f   : > { %956 = vmatprep.subr.mxu0 %v801_v1 }
  0x40   : > { %957 = vmatpush3.msra.mxu0 %v801_v1 }
  0x41   : > { %958 = vmatprep.subr.mxu0 %v800_v2 }
  0x42   : > { %959 = vmatpush3.msra.mxu0 %v800_v2 }
  0x43   : > { %960 = vmatprep.subr.mxu0 %v799_v3 }
  0x44   : > { %961 = vmatpush3.msra.mxu0 %v799_v3 }
  0x45   : > { %962 = vmatprep.subr.mxu0 %v798_v4 }
  0x46   : > { %963 = vmatpush3.msra.mxu0 %v798_v4 }
  0x47   : > { %964 = vmatprep.subr.mxu0 %v797_v5 }
  0x48   : > { %965 = vmatpush3.msra.mxu0 %v797_v5 }
  0x49   : > { %966 = vmatprep.subr.mxu0 %v796_v6 }
  0x4a   : > { %967 = vmatpush3.msra.mxu0 %v796_v6 }
  0x4b   : > { %968 = vmatprep.subr.mxu0 %v795_v7 }
  0x4c   : > { %969 = vmatpush3.msra.mxu0 %v795_v7 }
  0x4d   : > { %970 = vmatprep.subr.mxu0 %v794_v9 }
  0x4e   : > { %971 = vmatpush3.msra.mxu0 %v794_v9 }
  0x4f   : > { %973 = vmatmul.mubr.f32.vlgmr.msra.gmra.mxu0 %v538_v10 }
  0xee   : > { %v904_v11 = vpop.f32.mrf.mxu0 }
  0xef   : > { %v939_v12 = vpop.f32.mrf.mxu1 }
  0xf0   : > { %v432_v13 = vpop.f32.mrf.mxu0  ;;  %v513_v15 = vadd.f32 %v939_v12, %v904_v11 }
  0xf1   : > { %v507_v14 = vpop.f32.mrf.mxu1 }
  0xf2   : > { %v508_v17 = vadd.f32 %v507_v14, %v432_v13 }
 0x10f   : > { %v974_v16 = vpop.f32.mrf.mxu0 }
 0x110   : > { %v617_v18 = vadd.f32 %v974_v16, %v513_v15 }
 0x111   : > { %v607_v19 = vpop.f32.mrf.mxu0 }
 0x112   : > { %619 = vst [vmem:[%s253_s27 + $0x8] sm:$0xff] %v617_v18  ;;  %v616_v20 = vadd.f32 %v607_v19, %v508_v17  ;;  %v628_v21 = vmul.f32 %v617_v18, %v617_v18 }
 0x114   : > { %618 = vst [vmem:[%s253_s27] sm:$0xff] %v616_v20  ;;  %v620_v22 = vadd.f32 %v617_v18, %v616_v20  ;;  %v627_v23 = vmul.f32 %v616_v20, %v616_v20 }
 0x116   : > { %v621_v24 = vrot.slane %v620_v22, 4  ;;  %v629_v25 = vadd.f32 %v628_v21, %v627_v23 }
 0x118   : > { %v622_v26 = vadd.f32 %v621_v24, %v620_v22  ;;  %v630_v27 = vrot.slane %v629_v25, 4 }
 0x11a   : > { %v623_v28 = vrot.slane %v622_v26, 2  ;;  %v631_v29 = vadd.f32 %v630_v27, %v629_v25 }
 0x11c   : > { %v624_v30 = vadd.f32 %v623_v28, %v622_v26  ;;  %v632_v31 = vrot.slane %v631_v29, 2 }
 0x11e   : > { %v625_v32 = vrot.slane %v624_v30, 1  ;;  %v633_v33 = vadd.f32 %v632_v31, %v631_v29 }
 0x120   : > { %v634_v34 = vrot.slane %v633_v33, 1  ;;  %v626_v35 = vadd.f32 %v625_v32, %v624_v30 }
 0x122   : > { %v635_v36 = vadd.f32 %v634_v34, %v633_v33 }
 0x124   : > { %v636_v37 = vsel %vm311_vm0, %v626_v35, %v635_v36 }
 0x125   : > { %641 = vst [vmem:[%s258_s30] sm:$0x3] %v636_v37 }
 0x126 PF: > { %s16_s20 = sadd.s32 1, %s1022_s20   ;;  %s1277_s18 = smov %s1018_s19 }
 0x127   : > { %p13_p5 = scmp.ge.s32.totalorder %s16_s20, 4   ;;  %s1278_s19 = smov %s1280_s21 }
 0x129   :  { %15 = sbr.rel (!%p13_p5) target bundleno = 2 (0x2), region = 91 }

</bundles_post_ra>
